<compile_context>
chip_gen: v6e
topology: v6e:2x2x1
jax: 0.10.0
libtpu: 0.0.40
codegen_flags: <defaults>
</compile_context>

<pallas_src>
import jax
import jax.numpy as jnp
from jax.experimental import pallas as pl
from jax.experimental.pallas import tpu as pltpu

_LANE = 128


def _round_up(v, m):
    return ((v + m - 1) // m) * m


def _sublane_multiple(itemsize):
    # Minimum sublane granularity of a VMEM tile for this element size.
    if itemsize >= 4:
        return 8
    if itemsize == 2:
        return 16
    return 32


def _s3_kernel_dense(p_ref, x_ref, o_ref):
    """Small-S path: unrolled S*S scalar-coefficient multiply-accumulate.

    p_ref : (S*S + 1,) SMEM f32 -- row-major A = w0*R + w1*I, then bias.
    x_ref : (TB, S, TL) VMEM    -- TB batch rows, S segments, TL lanes.
    o_ref : (TB, S, TL) VMEM
    """
    S = x_ref.shape[1]
    # Read the S*S + 1 SMEM scalars once (cheap scalar regs), then stream the
    # tile straight from VMEM: no full-tile hoist, each output row is written
    # as soon as it is finished (keeps vreg pressure ~O(1) rows).
    coef = [[p_ref[j * S + s] for s in range(S)] for j in range(S)]
    bias = p_ref[S * S]
    for j in range(S):
        acc = x_ref[:, 0, :].astype(jnp.float32) * coef[j][0]
        for s in range(1, S):
            acc = acc + x_ref[:, s, :].astype(jnp.float32) * coef[j][s]
        o_ref[:, j, :] = (acc + bias).astype(o_ref.dtype)


def _s3_kernel_perm(perm_ref, coef_ref, x_ref, o_ref):
    """Large-S path: out[j] = w_self*x[j] + c[j]*x[perm[j]] + bias.

    Valid because R has at most one nonzero (==1) per row, so A = w0*R + w1*I
    has at most two; correct even when perm[j] == j (terms simply add).

    perm_ref : (S,) SMEM int32      -- column of the (only) nonzero of R row j.
    coef_ref : (S + 2,) SMEM f32    -- [w0*mask_0 .. w0*mask_{S-1}, w1, bias].
    """
    S = x_ref.shape[1]
    w_self = coef_ref[S]
    bias = coef_ref[S + 1]
    for j in range(S):
        p = perm_ref[j]
        x_self = x_ref[:, pl.ds(j, 1), :].astype(jnp.float32)
        x_gather = x_ref[:, pl.ds(p, 1), :].astype(jnp.float32)
        acc = x_self * w_self + x_gather * coef_ref[j] + bias
        o_ref[:, pl.ds(j, 1), :] = acc.astype(o_ref.dtype)


def s3_forward_pallas(x, result_matrix, conv_w, conv_b, num_segments,
                      *, tile_bytes=4 * 1024 * 1024, perm_path_threshold=8):
    """x: (B, T, C). Returns (B, T, C) in the same dtype as x."""
    B, T, C = x.shape
    S = int(num_segments)
    # TODO(synk): torch.chunk tolerates T % S != 0 (uneven last segment); only
    # the evenly divisible case is implemented here.
    assert T % S == 0, "time steps must be divisible by num_segments"
    L = T // S
    LC = L * C
    dtype = x.dtype
    itemsize = jnp.dtype(dtype).itemsize
    s_pad = _round_up(S, _sublane_multiple(itemsize))  # VMEM sublane padding

    # (B, T, C) -> (B, S, L*C): pure row-major reshape (no HBM pass, no cast).
    x_view = x.reshape(B, S, LC)

    # ---- lane tiling: TL multiple of 128 (or full extent when LC < 128);
    #      ragged last lane block is masked by Pallas: no wrapper pad/slice ----
    if LC <= _LANE:
        TL = LC
    else:
        budget_tl = max(_LANE, (tile_bytes // (s_pad * itemsize)) // _LANE * _LANE)
        TL = min(budget_tl, (LC // _LANE) * _LANE)

    # ---- batch tiling: TB need not divide B (ragged last block is masked) ----
    per_b_bytes = s_pad * TL * itemsize            # sublane-padded bytes / batch row
    tb_cap = max(1, tile_bytes // per_b_bytes)
    TB = min(B, tb_cap)

    # Keep >=2 grid steps on a "parallel" axis when possible so both v7x
    # TensorCores get work even if the whole problem fits in one tile
    # (one extra ~0.35us step on single-TC v5e/v6e: negligible).
    if pl.cdiv(B, TB) * pl.cdiv(LC, TL) == 1:
        if B >= 2:
            TB = pl.cdiv(B, 2)
        elif LC >= 2 * _LANE:
            TL = max(_LANE, (LC // 2) // _LANE * _LANE)

    grid = (pl.cdiv(B, TB), pl.cdiv(LC, TL))

    # ---- fuse shuffle + 1x1 Conv1d stitch:
    #      out_seg[j] = sum_s A[j,s] * x_seg[s] + bias, A = w0*R + w1*I ----
    w0 = conv_w[0, 0, 0].astype(jnp.float32)   # weight on the shuffled stream
    w1 = conv_w[0, 1, 0].astype(jnp.float32)   # weight on the original stream
    bias = conv_b.reshape(-1)[0].astype(jnp.float32)
    R = result_matrix.astype(jnp.float32)

    if S > perm_path_threshold:
        # Permutation-structured path: O(1) FMAs per output row, any S.
        perm = jnp.argmax(R, axis=1).astype(jnp.int32)
        row_val = jnp.max(R, axis=1)                         # 0 or 1 per row
        coef = jnp.concatenate(
            [w0 * row_val, jnp.stack([w1, bias])]).astype(jnp.float32)
        kernel = _s3_kernel_perm
        scalar_args = (perm, coef)
        scalar_specs = [pl.BlockSpec(memory_space=pltpu.MemorySpace.SMEM)] * 2
    else:
        A = w0 * R + w1 * jnp.eye(S, dtype=jnp.float32)
        params = jnp.concatenate(
            [A.reshape(-1), jnp.reshape(bias, (1,))]).astype(jnp.float32)
        kernel = _s3_kernel_dense
        scalar_args = (params,)
        scalar_specs = [pl.BlockSpec(memory_space=pltpu.MemorySpace.SMEM)]

    # VMEM limit from the actual (sublane-padded) double-buffered footprint:
    # 2 buffers x (input + output) x padded tile, plus slack.  Capped below
    # v7x's 64 MiB physical VMEM; v5e/v6e have 128 MiB physical.
    tile_padded_bytes = TB * s_pad * TL * itemsize
    vmem_limit = int(min(48 * 1024 * 1024,
                         max(4 * 1024 * 1024,
                             4 * tile_padded_bytes + 2 * 1024 * 1024)))

    out_view = pl.pallas_call(
        kernel,
        out_shape=jax.ShapeDtypeStruct((B, S, LC), dtype),
        grid_spec=pltpu.PrefetchScalarGridSpec(
            num_scalar_prefetch=0,
            grid=grid,
            in_specs=scalar_specs + [
                pl.BlockSpec((TB, S, TL), lambda i, l: (i, 0, l)),
            ],
            out_specs=pl.BlockSpec((TB, S, TL), lambda i, l: (i, 0, l)),
        ),
        compiler_params=pltpu.CompilerParams(
            dimension_semantics=("parallel", "parallel"),
            vmem_limit_bytes=vmem_limit,
        ),
    )(*scalar_args, x_view)

    return out_view.reshape(B, T, C)


def build_result_matrix(shuffle_vector):
    """Replicates argsort + scatter + normalize + abs from the PyTorch forward.

    result_matrix[i, desc_idx[i]] = sv_sum[i]; nonzero entries are then
    divided by their abs and abs'd, so final entries are exactly {0, 1}.
    NOTE: torch.argsort(descending=True) and jnp.argsort(-x) may break exact
    ties differently; with the module's kaiming*0.001+0.01 init this is
    measure-zero.
    """
    sv = shuffle_vector
    if sv.ndim > 1:
        sv_sum = sv.sum(axis=tuple(range(sv.ndim - 1)))
    else:
        sv_sum = sv
    S = sv_sum.shape[0]
    desc_idx = jnp.argsort(-sv_sum)
    one_hot = jax.nn.one_hot(desc_idx, S, dtype=jnp.float32)
    nonzero = (sv_sum != 0).astype(jnp.float32)[:, None]
    return one_hot * nonzero


def s3_reference(x, result_matrix, conv_w, conv_b, num_segments):
    """Pure-JAX reference for verification."""
    B, T, C = x.shape
    S = num_segments
    L = T // S
    xv = x.astype(jnp.float32).reshape(B, S, L, C)
    shuffled = jnp.einsum("js,bslc->bjlc", result_matrix.astype(jnp.float32),
                          xv).reshape(B, T, C)
    return conv_w[0, 0, 0] * shuffled + conv_w[0, 1, 0] * x.astype(jnp.float32) + conv_b[0]


# TODO(synk): the use_conv_w_avg=False (softmax scalar weights) and
# use_stitch=False branches are not wired up; both reduce to a different
# (A, bias) pair and would reuse the same kernels.

if __name__ == "__main__":
    key = jax.random.PRNGKey(0)
    k_sv, k_w, k_b, k_x, k_x2 = jax.random.split(key, 5)

    # Module config: num_segments=4, shuffle_vector_dim=2, use_conv_w_avg=True,
    # initialization_type='kaiming', use_stitch=True.
    num_segments = 4
    shuffle_vector_dim = 2

    # Deterministic "kaiming fan_out + relu" style init for the shuffle vector
    # (std = sqrt(2 / fan_out)), then scaled *0.001 + 0.01 as in the module.
    sv_shape = (num_segments,) * shuffle_vector_dim
    fan_out = num_segments
    std = (2.0 / fan_out) ** 0.5
    shuffle_vector = (
        jax.random.normal(k_sv, sv_shape, dtype=jnp.float32) * std
    ) * 0.001 + 0.01

    # Conv1d(in_channels=2, out_channels=1, kernel_size=1) parameters.
    conv_w = jax.random.uniform(
        k_w, (1, 2, 1), dtype=jnp.float32, minval=-0.5, maxval=0.5)
    conv_b = jax.random.uniform(
        k_b, (1,), dtype=jnp.float32, minval=-0.5, maxval=0.5)

    result_matrix = build_result_matrix(shuffle_vector)

    # Test 1: module-consistent small shape, lane dim exactly 128.
    B, T, C = 2, 16, 32
    x = jax.random.normal(k_x, (B, T, C), dtype=jnp.float32)
    out = jax.block_until_ready(
        s3_forward_pallas(x, result_matrix, conv_w, conv_b, num_segments))
    ref = s3_reference(x, result_matrix, conv_w, conv_b, num_segments)
    assert out.shape == (B, T, C) and out.dtype == x.dtype
    assert jnp.allclose(out, ref, atol=1e-5, rtol=1e-5), "mismatch (test 1)"

    # Test 2: ragged lane dim (L*C = 192 -> one full + one partial 128-block),
    # exercising Pallas partial-block masking with no wrapper pad/slice.
    B2, T2, C2 = 3, 16, 48
    x2 = jax.random.normal(k_x2, (B2, T2, C2), dtype=jnp.float32)
    out2 = jax.block_until_ready(
        s3_forward_pallas(x2, result_matrix, conv_w, conv_b, num_segments))
    ref2 = s3_reference(x2, result_matrix, conv_w, conv_b, num_segments)
    assert out2.shape == (B2, T2, C2)
    assert jnp.allclose(out2, ref2, atol=1e-5, rtol=1e-5), "mismatch (test 2)"

    print("KERNEL_OK")
</pallas_src>

<mosaic_0001>
module attributes {stable_mosaic.version = 11 : i64} {
  func.func @_s3_kernel_dense(%arg0: i32, %arg1: i32, %arg2: memref<17xf32, #tpu.memory_space<smem>>, %arg3: memref<1x4x128xf32, #tpu.memory_space<vmem>>, %arg4: memref<1x4x128xf32, #tpu.memory_space<vmem>>) attributes {dimension_semantics = [#tpu.dimension_semantics<parallel>, #tpu.dimension_semantics<parallel>], iteration_bounds = array<i64: 2, 1>, scalar_prefetch = 0 : i64, scratch_operands = 0 : i64, tpu.core_type = #tpu.core_type<tc>, window_params = [{transform_indices = @transform_0, window_bounds = array<i64: 17>}, {transform_indices = @transform_1, window_bounds = array<i64: 1, 4, 128>}, {transform_indices = @transform_2, window_bounds = array<i64: 1, 4, 128>}]} {
    %c0 = arith.constant 0 : index
    %0 = memref.load %arg2[%c0] : memref<17xf32, #tpu.memory_space<smem>>
    %c1 = arith.constant 1 : index
    %1 = memref.load %arg2[%c1] : memref<17xf32, #tpu.memory_space<smem>>
    %c2 = arith.constant 2 : index
    %2 = memref.load %arg2[%c2] : memref<17xf32, #tpu.memory_space<smem>>
    %c3 = arith.constant 3 : index
    %3 = memref.load %arg2[%c3] : memref<17xf32, #tpu.memory_space<smem>>
    %c4 = arith.constant 4 : index
    %4 = memref.load %arg2[%c4] : memref<17xf32, #tpu.memory_space<smem>>
    %c5 = arith.constant 5 : index
    %5 = memref.load %arg2[%c5] : memref<17xf32, #tpu.memory_space<smem>>
    %c6 = arith.constant 6 : index
    %6 = memref.load %arg2[%c6] : memref<17xf32, #tpu.memory_space<smem>>
    %c7 = arith.constant 7 : index
    %7 = memref.load %arg2[%c7] : memref<17xf32, #tpu.memory_space<smem>>
    %c8 = arith.constant 8 : index
    %8 = memref.load %arg2[%c8] : memref<17xf32, #tpu.memory_space<smem>>
    %c9 = arith.constant 9 : index
    %9 = memref.load %arg2[%c9] : memref<17xf32, #tpu.memory_space<smem>>
    %c10 = arith.constant 10 : index
    %10 = memref.load %arg2[%c10] : memref<17xf32, #tpu.memory_space<smem>>
    %c11 = arith.constant 11 : index
    %11 = memref.load %arg2[%c11] : memref<17xf32, #tpu.memory_space<smem>>
    %c12 = arith.constant 12 : index
    %12 = memref.load %arg2[%c12] : memref<17xf32, #tpu.memory_space<smem>>
    %c13 = arith.constant 13 : index
    %13 = memref.load %arg2[%c13] : memref<17xf32, #tpu.memory_space<smem>>
    %c14 = arith.constant 14 : index
    %14 = memref.load %arg2[%c14] : memref<17xf32, #tpu.memory_space<smem>>
    %c15 = arith.constant 15 : index
    %15 = memref.load %arg2[%c15] : memref<17xf32, #tpu.memory_space<smem>>
    %c16 = arith.constant 16 : index
    %16 = memref.load %arg2[%c16] : memref<17xf32, #tpu.memory_space<smem>>
    %c0_0 = arith.constant 0 : index
    %c0_1 = arith.constant 0 : index
    %c0_2 = arith.constant 0 : index
    %17 = vector.load %arg3[%c0_0, %c0_1, %c0_2] : memref<1x4x128xf32, #tpu.memory_space<vmem>>, vector<1x1x128xf32>
    %18 = vector.shape_cast %17 : vector<1x1x128xf32> to vector<1x128xf32>
    %19 = vector.broadcast %0 : f32 to vector<1x128xf32>
    %20 = arith.mulf %18, %19 : vector<1x128xf32>
    %c0_3 = arith.constant 0 : index
    %c1_4 = arith.constant 1 : index
    %c0_5 = arith.constant 0 : index
    %21 = vector.load %arg3[%c0_3, %c1_4, %c0_5] : memref<1x4x128xf32, #tpu.memory_space<vmem>>, vector<1x1x128xf32>
    %22 = vector.shape_cast %21 : vector<1x1x128xf32> to vector<1x128xf32>
    %23 = vector.broadcast %1 : f32 to vector<1x128xf32>
    %24 = arith.mulf %22, %23 : vector<1x128xf32>
    %25 = arith.addf %20, %24 : vector<1x128xf32>
    %c0_6 = arith.constant 0 : index
    %c2_7 = arith.constant 2 : index
    %c0_8 = arith.constant 0 : index
    %26 = vector.load %arg3[%c0_6, %c2_7, %c0_8] : memref<1x4x128xf32, #tpu.memory_space<vmem>>, vector<1x1x128xf32>
    %27 = vector.shape_cast %26 : vector<1x1x128xf32> to vector<1x128xf32>
    %28 = vector.broadcast %2 : f32 to vector<1x128xf32>
    %29 = arith.mulf %27, %28 : vector<1x128xf32>
    %30 = arith.addf %25, %29 : vector<1x128xf32>
    %c0_9 = arith.constant 0 : index
    %c3_10 = arith.constant 3 : index
    %c0_11 = arith.constant 0 : index
    %31 = vector.load %arg3[%c0_9, %c3_10, %c0_11] : memref<1x4x128xf32, #tpu.memory_space<vmem>>, vector<1x1x128xf32>
    %32 = vector.shape_cast %31 : vector<1x1x128xf32> to vector<1x128xf32>
    %33 = vector.broadcast %3 : f32 to vector<1x128xf32>
    %34 = arith.mulf %32, %33 : vector<1x128xf32>
    %35 = arith.addf %30, %34 : vector<1x128xf32>
    %36 = vector.broadcast %16 : f32 to vector<1x128xf32>
    %37 = arith.addf %35, %36 : vector<1x128xf32>
    %c0_12 = arith.constant 0 : index
    %c0_13 = arith.constant 0 : index
    %c0_14 = arith.constant 0 : index
    %38 = vector.load %arg4[%c0_12, %c0_13, %c0_14] : memref<1x4x128xf32, #tpu.memory_space<vmem>>, vector<1x1x128xf32>
    %39 = vector.shape_cast %38 : vector<1x1x128xf32> to vector<1x128xf32>
    %40 = vector.shape_cast %37 : vector<1x128xf32> to vector<1x1x128xf32>
    tpu.vector_store %arg4[%c0_12, %c0_13, %c0_14], %40 {strides = array<i32>} : memref<1x4x128xf32, #tpu.memory_space<vmem>>, vector<1x1x128xf32>,
    %c0_15 = arith.constant 0 : index
    %c0_16 = arith.constant 0 : index
    %c0_17 = arith.constant 0 : index
    %41 = vector.load %arg3[%c0_15, %c0_16, %c0_17] : memref<1x4x128xf32, #tpu.memory_space<vmem>>, vector<1x1x128xf32>
    %42 = vector.shape_cast %41 : vector<1x1x128xf32> to vector<1x128xf32>
    %43 = vector.broadcast %4 : f32 to vector<1x128xf32>
    %44 = arith.mulf %42, %43 : vector<1x128xf32>
    %c0_18 = arith.constant 0 : index
    %c1_19 = arith.constant 1 : index
    %c0_20 = arith.constant 0 : index
    %45 = vector.load %arg3[%c0_18, %c1_19, %c0_20] : memref<1x4x128xf32, #tpu.memory_space<vmem>>, vector<1x1x128xf32>
    %46 = vector.shape_cast %45 : vector<1x1x128xf32> to vector<1x128xf32>
    %47 = vector.broadcast %5 : f32 to vector<1x128xf32>
    %48 = arith.mulf %46, %47 : vector<1x128xf32>
    %49 = arith.addf %44, %48 : vector<1x128xf32>
    %c0_21 = arith.constant 0 : index
    %c2_22 = arith.constant 2 : index
    %c0_23 = arith.constant 0 : index
    %50 = vector.load %arg3[%c0_21, %c2_22, %c0_23] : memref<1x4x128xf32, #tpu.memory_space<vmem>>, vector<1x1x128xf32>
    %51 = vector.shape_cast %50 : vector<1x1x128xf32> to vector<1x128xf32>
    %52 = vector.broadcast %6 : f32 to vector<1x128xf32>
    %53 = arith.mulf %51, %52 : vector<1x128xf32>
    %54 = arith.addf %49, %53 : vector<1x128xf32>
    %c0_24 = arith.constant 0 : index
    %c3_25 = arith.constant 3 : index
    %c0_26 = arith.constant 0 : index
    %55 = vector.load %arg3[%c0_24, %c3_25, %c0_26] : memref<1x4x128xf32, #tpu.memory_space<vmem>>, vector<1x1x128xf32>
    %56 = vector.shape_cast %55 : vector<1x1x128xf32> to vector<1x128xf32>
    %57 = vector.broadcast %7 : f32 to vector<1x128xf32>
    %58 = arith.mulf %56, %57 : vector<1x128xf32>
    %59 = arith.addf %54, %58 : vector<1x128xf32>
    %60 = vector.broadcast %16 : f32 to vector<1x128xf32>
    %61 = arith.addf %59, %60 : vector<1x128xf32>
    %c0_27 = arith.constant 0 : index
    %c1_28 = arith.constant 1 : index
    %c0_29 = arith.constant 0 : index
    %62 = vector.load %arg4[%c0_27, %c1_28, %c0_29] : memref<1x4x128xf32, #tpu.memory_space<vmem>>, vector<1x1x128xf32>
    %63 = vector.shape_cast %62 : vector<1x1x128xf32> to vector<1x128xf32>
    %64 = vector.shape_cast %61 : vector<1x128xf32> to vector<1x1x128xf32>
    tpu.vector_store %arg4[%c0_27, %c1_28, %c0_29], %64 {strides = array<i32>} : memref<1x4x128xf32, #tpu.memory_space<vmem>>, vector<1x1x128xf32>,
    %c0_30 = arith.constant 0 : index
    %c0_31 = arith.constant 0 : index
    %c0_32 = arith.constant 0 : index
    %65 = vector.load %arg3[%c0_30, %c0_31, %c0_32] : memref<1x4x128xf32, #tpu.memory_space<vmem>>, vector<1x1x128xf32>
    %66 = vector.shape_cast %65 : vector<1x1x128xf32> to vector<1x128xf32>
    %67 = vector.broadcast %8 : f32 to vector<1x128xf32>
    %68 = arith.mulf %66, %67 : vector<1x128xf32>
    %c0_33 = arith.constant 0 : index
    %c1_34 = arith.constant 1 : index
    %c0_35 = arith.constant 0 : index
    %69 = vector.load %arg3[%c0_33, %c1_34, %c0_35] : memref<1x4x128xf32, #tpu.memory_space<vmem>>, vector<1x1x128xf32>
    %70 = vector.shape_cast %69 : vector<1x1x128xf32> to vector<1x128xf32>
    %71 = vector.broadcast %9 : f32 to vector<1x128xf32>
    %72 = arith.mulf %70, %71 : vector<1x128xf32>
    %73 = arith.addf %68, %72 : vector<1x128xf32>
    %c0_36 = arith.constant 0 : index
    %c2_37 = arith.constant 2 : index
    %c0_38 = arith.constant 0 : index
    %74 = vector.load %arg3[%c0_36, %c2_37, %c0_38] : memref<1x4x128xf32, #tpu.memory_space<vmem>>, vector<1x1x128xf32>
    %75 = vector.shape_cast %74 : vector<1x1x128xf32> to vector<1x128xf32>
    %76 = vector.broadcast %10 : f32 to vector<1x128xf32>
    %77 = arith.mulf %75, %76 : vector<1x128xf32>
    %78 = arith.addf %73, %77 : vector<1x128xf32>
    %c0_39 = arith.constant 0 : index
    %c3_40 = arith.constant 3 : index
    %c0_41 = arith.constant 0 : index
    %79 = vector.load %arg3[%c0_39, %c3_40, %c0_41] : memref<1x4x128xf32, #tpu.memory_space<vmem>>, vector<1x1x128xf32>
    %80 = vector.shape_cast %79 : vector<1x1x128xf32> to vector<1x128xf32>
    %81 = vector.broadcast %11 : f32 to vector<1x128xf32>
    %82 = arith.mulf %80, %81 : vector<1x128xf32>
    %83 = arith.addf %78, %82 : vector<1x128xf32>
    %84 = vector.broadcast %16 : f32 to vector<1x128xf32>
    %85 = arith.addf %83, %84 : vector<1x128xf32>
    %c0_42 = arith.constant 0 : index
    %c2_43 = arith.constant 2 : index
    %c0_44 = arith.constant 0 : index
    %86 = vector.load %arg4[%c0_42, %c2_43, %c0_44] : memref<1x4x128xf32, #tpu.memory_space<vmem>>, vector<1x1x128xf32>
    %87 = vector.shape_cast %86 : vector<1x1x128xf32> to vector<1x128xf32>
    %88 = vector.shape_cast %85 : vector<1x128xf32> to vector<1x1x128xf32>
    tpu.vector_store %arg4[%c0_42, %c2_43, %c0_44], %88 {strides = array<i32>} : memref<1x4x128xf32, #tpu.memory_space<vmem>>, vector<1x1x128xf32>,
    %c0_45 = arith.constant 0 : index
    %c0_46 = arith.constant 0 : index
    %c0_47 = arith.constant 0 : index
    %89 = vector.load %arg3[%c0_45, %c0_46, %c0_47] : memref<1x4x128xf32, #tpu.memory_space<vmem>>, vector<1x1x128xf32>
    %90 = vector.shape_cast %89 : vector<1x1x128xf32> to vector<1x128xf32>
    %91 = vector.broadcast %12 : f32 to vector<1x128xf32>
    %92 = arith.mulf %90, %91 : vector<1x128xf32>
    %c0_48 = arith.constant 0 : index
    %c1_49 = arith.constant 1 : index
    %c0_50 = arith.constant 0 : index
    %93 = vector.load %arg3[%c0_48, %c1_49, %c0_50] : memref<1x4x128xf32, #tpu.memory_space<vmem>>, vector<1x1x128xf32>
    %94 = vector.shape_cast %93 : vector<1x1x128xf32> to vector<1x128xf32>
    %95 = vector.broadcast %13 : f32 to vector<1x128xf32>
    %96 = arith.mulf %94, %95 : vector<1x128xf32>
    %97 = arith.addf %92, %96 : vector<1x128xf32>
    %c0_51 = arith.constant 0 : index
    %c2_52 = arith.constant 2 : index
    %c0_53 = arith.constant 0 : index
    %98 = vector.load %arg3[%c0_51, %c2_52, %c0_53] : memref<1x4x128xf32, #tpu.memory_space<vmem>>, vector<1x1x128xf32>
    %99 = vector.shape_cast %98 : vector<1x1x128xf32> to vector<1x128xf32>
    %100 = vector.broadcast %14 : f32 to vector<1x128xf32>
    %101 = arith.mulf %99, %100 : vector<1x128xf32>
    %102 = arith.addf %97, %101 : vector<1x128xf32>
    %c0_54 = arith.constant 0 : index
    %c3_55 = arith.constant 3 : index
    %c0_56 = arith.constant 0 : index
    %103 = vector.load %arg3[%c0_54, %c3_55, %c0_56] : memref<1x4x128xf32, #tpu.memory_space<vmem>>, vector<1x1x128xf32>
    %104 = vector.shape_cast %103 : vector<1x1x128xf32> to vector<1x128xf32>
    %105 = vector.broadcast %15 : f32 to vector<1x128xf32>
    %106 = arith.mulf %104, %105 : vector<1x128xf32>
    %107 = arith.addf %102, %106 : vector<1x128xf32>
    %108 = vector.broadcast %16 : f32 to vector<1x128xf32>
    %109 = arith.addf %107, %108 : vector<1x128xf32>
    %c0_57 = arith.constant 0 : index
    %c3_58 = arith.constant 3 : index
    %c0_59 = arith.constant 0 : index
    %110 = vector.load %arg4[%c0_57, %c3_58, %c0_59] : memref<1x4x128xf32, #tpu.memory_space<vmem>>, vector<1x1x128xf32>
    %111 = vector.shape_cast %110 : vector<1x1x128xf32> to vector<1x128xf32>
    %112 = vector.shape_cast %109 : vector<1x128xf32> to vector<1x1x128xf32>
    tpu.vector_store %arg4[%c0_57, %c3_58, %c0_59], %112 {strides = array<i32>} : memref<1x4x128xf32, #tpu.memory_space<vmem>>, vector<1x1x128xf32>,
    return
  }
  func.func @transform_0(%arg0: i32, %arg1: i32) -> i32 {
    %c0_i32 = arith.constant 0 : i32
    %c0_i32_0 = arith.constant 0 : i32
    return %c0_i32 : i32
  }
  func.func @transform_1(%arg0: i32, %arg1: i32) -> (i32, i32, i32) {
    %c0_i32 = arith.constant 0 : i32
    %c0_i32_0 = arith.constant 0 : i32
    return %arg0, %c0_i32, %arg1 : i32, i32, i32
  }
  func.func @transform_2(%arg0: i32, %arg1: i32) -> (i32, i32, i32) {
    %c0_i32 = arith.constant 0 : i32
    %c0_i32_0 = arith.constant 0 : i32
    return %arg0, %c0_i32, %arg1 : i32, i32, i32
  }
}

</mosaic_0001>

<bundles_post_ra>
// kernel: tpu_custom_call.1
= control target key start
LH: loop header
LB: loop body
LE: loop exit
PB: predicated region body
PF: predicated region fallthrough
CT: control target
= control target key end

     0   :  { %7 = vsyncpa [#allocation5], 0  ;;  %s825_s0 = inlined_call_operand.hbm [shape: f32[17], index: 0, kind: input, shape index: {}]   ;;  %s826_s1 = inlined_call_operand.hbm [shape: f32[2,4,128], index: 1, kind: input, shape index: {}]   ;;  %s827_s2 = inlined_call_operand.hbm [shape: f32[2,4,128], index: 2, kind: output, shape index: {}]  }
   0x1   :  { %8 = vsyncpa [#allocation3], 0 }
   0x2   :  { %10 = vsyncpa [#allocation3 + $0x1], 0 }
   0x3   :  { %11 = vsyncpa [#allocation4], 0 }
   0x4   :  { %13 = vsyncpa [#allocation4 + $0x1], 0  ;;  %s628_s9 = smov 0   ;;  %s630_s10 = smov 0  }
   0x5   :  { %s632_s11 = smov 0   ;;  %s634_s12 = smov 0  }
   0x6   :  { %s636_s13 = smov 0   ;;  %s638_s14 = smov 0  }
   0x7 LB: > { %s381_s15 = sadd.s32 4294967295, %s608_s14   ;;  %s382_s16 = sadd.s32 4294967294, %s608_s14   ;;  %s608_s14 = sphi %s638_s14, %s19_s14   ;;  %s604_s13 = sphi %s636_s13, %s844_s13   ;;  %s600_s12 = sphi %s634_s12, %s843_s12   ;;  %s596_s11 = sphi %s632_s11, %s842_s11   ;;  %s592_s10 = sphi %s630_s10, %s841_s10   ;;  %s588_s9 = sphi %s628_s9, %s840_s9  }
   0x8   : > { %p74_p0 = scmp.ne.s32.totalorder %s592_s10, %s588_s9  ;;  %p662_p1 = scmp.eq.s32.totalorder %s381_s15, 0 }
   0x9   : > { %p666_p2 = scmp.eq.s32.totalorder %s381_s15, 1  ;;  %p106_p3 = scmp.eq.s32.totalorder %s382_s16, 1 }
   0xa   : > { %p672_p4 = por %p662_p1, %p74_p0  ;;  %p383_p5 = scmp.ge.s32.totalorder %s608_s14, 1 }
   0xb   : > { %p677_p6 = por %p106_p3, %p74_p0  ;;  %p113_p7 = scmp.lt.s32.totalorder %s608_s14, 3 }
   0xc   : > { %s31_s22 = sadd.s32 1, %s604_s13  ;;  %s61_s23 = sadd.s32 1, %s596_s11 }
   0xd   : > { %s832_s20 = scalar_select %p677_p6, 1, 0 }
   0xe   : > { %p682_p8 = pnand %p383_p5, %p113_p7  ;;  %p33_p12 = scmp.ge.s32.totalorder %s31_s22, 2 }
   0xf   : > { %p68_p13 = scmp.ne.s32.totalorder %s596_s11, %s592_s10  ;;  %p69_p0 = scmp.eq.s32.totalorder %s608_s14, 0 }
  0x10   : > { %p420_p10 = pneg %p682_p8  ;;  %s610_s24 = smov [#allocation2]  }
  0x11   : > { %s846_s22 = smov (%p33_p12, %s31_s22), 0  ;;  %p701_p3 = por %p69_p0, %p68_p13 }
  0x12   : > { %p421_p11 = pnand %p420_p10, %p662_p1  ;;  %p707_p5 = por %p666_p2, %p68_p13 }
  0x13   : > { %s56_s29 = ssub.s32 %s604_s13, %s846_s22  ;;  %p433_p7 = scmp.lt.s32.totalorder %s608_s14, 2 }
  0x14   : > { %423 = dma.hbm_to_smem (!%p421_p11), %s825_s0, 16, %s610_s24, [#allocation5]  }
  0x15   : > { %s835_s28 = scalar_select %p707_p5, 1, 0 }
  0x16   : > { %p59_p10 = scmp.eq.s32.totalorder %s56_s29, 0  ;;  %s135_s30 = sand.u32 1, %s596_s11  }
  0x17   : > { %s386_s3 = sshll.u32 %s135_s30, 2  ;;  %s387_s5 = sshll.u32 %s604_s13, 6 }
  0x18   : > { %s716_s4 = scalar_select %p59_p10, %s596_s11, %s61_s23  }
  0x19   : > { %s145_s8 = scalar_lea.hbm %s826_s1, %s387_s5  ;;  %s139_s15 = scalar_lea.vmem [#allocation6], %s386_s3 }
  0x1a   : > { %s147_s16 = sshll.u32 %s139_s15, 4  ;;  %p724_p2 = pnand %p433_p7, %p701_p3  ;;  %s148_s16 = int_to_ptr.vmem [resolvable:$true] %s147_s16 }
  0x1b   : > { %s136_s24 = scalar_lea.sflag [#allocation3], %s135_s30  ;;  %s509_s25 = scalar_lea.vmem %s148_s16, 64 }
  0x1c   : > { %p498_p11 = pneg %p724_p2  ;;  %p510_p12 = scmp.ne.s32.totalorder %s148_s16, %s509_s25 }
  0x1d   : > { %s611_s23 = smov [#allocation6]  }
  0x1e   : > { %p512_p13 = pnand %p510_p12, %p498_p11  ;;  %s514_s26 = sshll.u32 %s611_s23, 4  ;;  %s515_s26 = int_to_ptr.vmem [resolvable:$false] %s514_s26 }
  0x1f   : > { %s516_s29 = scalar_lea.vmem %s515_s26, 128  ;;  %p517_p10 = scmp.lt.s32.totalorder %s148_s16, %s515_s26 }
  0x20   : > { %p513_p0 = pneg %p512_p13  ;;  %p518_p9 = scmp.lt.s32.totalorder %s516_s29, %s509_s25 }
  0x22   : > { %p519_p6 = por %p518_p9, %p517_p10 }
  0x24   : > { %p520_p5 = pnand %p519_p6, %p513_p0 }
  0x26   : > { %523 = shalt.err (!%p520_p5)
}
  0x27   : > { %427 = dma.hbm_to_vmem [thread:$0]  (!%p724_p2), %s145_s8, 64, %s148_s16, %s136_s24  }
  0x28   : > { %156 = sbr.rel (%p682_p8) target bundleno = 96 (0x60), region = 28 }
  0x2d   : > { %575 = dma.done.wait (%p662_p1), [#allocation5], 16  }
  0x2e   : > { %577 = vsyncadd (%p662_p1), [#allocation5], 4294967280  ;;  %s739_s27 = sand.u32 1, %s592_s10  }
  0x2f   : > { %s390_s30 = sshll.u32 %s739_s27, 2  ;;  %s163_s3 = scalar_lea.sflag [#allocation3], %s739_s27 }
  0x30   : > { %s745_s5 = scalar_lea.vmem [#allocation6], %s390_s30 }
  0x31   : > { %579 = dma.done.wait (%p672_p4), %s163_s3, 64  }
  0x32   : > { %581 = vsyncadd (%p672_p4), %s163_s3, 4294967232 }
  0x33   : > { %171 = sfence }
  0x34   : > { %s188_s17 = sld [smem:[#allocation2]]  ;;  %v205_v0 = vld [vmem:[%s745_s5] sm:$0x1]  ;;  %v208_v1 = vld [vmem:[%s745_s5 + $0x1] sm:$0x1]  ;;  %p837_p4 = scmp.ne.s32.totalorder %s835_s28, 0 }
  0x35   : > { %s392_s21 = sld [smem:[#allocation2 + $0x1]]  ;;  %v212_v3 = vld [vmem:[%s745_s5 + $0x2] sm:$0x1]  ;;  %v216_v6 = vld [vmem:[%s745_s5 + $0x3] sm:$0x1] }
  0x36   : > { %s393_s6 = sld [smem:[#allocation2 + $0x2]]  ;;  %v223_v11 = vld [vmem:[%s745_s5] sm:$0x1]  ;;  %v226_v14 = vld [vmem:[%s745_s5 + $0x1] sm:$0x1] }
  0x37   : > { %s394_s7 = sld [smem:[#allocation2 + $0x3]]  ;;  %v230_v16 = vld [vmem:[%s745_s5 + $0x2] sm:$0x1]  ;;  %v234_v20 = vld [vmem:[%s745_s5 + $0x3] sm:$0x1] }
  0x38   : > { %s407_s8 = sld [smem:[#allocation2 + $0x10]]  ;;  %v240_v24 = vld [vmem:[%s745_s5] sm:$0x1]  ;;  %v243_v28 = vld [vmem:[%s745_s5 + $0x1] sm:$0x1] }
  0x39   : > { %s395_s15 = sld [smem:[#allocation2 + $0x4]]  ;;  %v247_v32 = vld [vmem:[%s745_s5 + $0x2] sm:$0x1]  ;;  %v251_v36 = vld [vmem:[%s745_s5 + $0x3] sm:$0x1] }
  0x3a   : > { %v206_v2 = vstv %s188_s17  ;;  %s396_s16 = sld [smem:[#allocation2 + $0x5]]  ;;  %v257_v40 = vld [vmem:[%s745_s5] sm:$0x1]  ;;  %v260_v43 = vld [vmem:[%s745_s5 + $0x1] sm:$0x1] }
  0x3b   : > { %v207_v4 = vmul.f32 %v206_v2, %v205_v0  ;;  %v209_v5 = vstv %s392_s21  ;;  %s397_s19 = sld [smem:[#allocation2 + $0x6]]  ;;  %v264_v48 = vld [vmem:[%s745_s5 + $0x2] sm:$0x1]  ;;  %v268_v51 = vld [vmem:[%s745_s5 + $0x3] sm:$0x1] }
  0x3c   : > { %v210_v7 = vmul.f32 %v209_v5, %v208_v1  ;;  %v213_v8 = vstv %s393_s6  ;;  %s398_s18 = sld [smem:[#allocation2 + $0x7]]  ;;  %s773_s6 = scalar_lea.vmem [#allocation7], %s390_s30 }
  0x3d   : > { %v214_v9 = vmul.f32 %v213_v8, %v212_v3  ;;  %v217_v10 = vstv %s394_s7  ;;  %s399_s24 = sld [smem:[#allocation2 + $0x8]]  ;;  %s409_s30 = sshll.u32 %s600_s12, 6 }
  0x3e   : > { %v211_v12 = vadd.f32 %v210_v7, %v207_v4  ;;  %v218_v13 = vmul.f32 %v217_v10, %v216_v6  ;;  %s400_s25 = sld [smem:[#allocation2 + $0x9]]  ;;  %v220_v21 = vstv %s407_s8  ;;  %s289_s7 = sshll.u32 %s773_s6, 4  ;;  %s290_s7 = int_to_ptr.vmem [resolvable:$true] %s289_s7 }
  0x3f   : > { %v224_v15 = vstv %s395_s15  ;;  %s758_s23 = sld [smem:[#allocation2 + $0xa]]  ;;  %s287_s15 = scalar_lea.hbm %s827_s2, %s409_s30 }
  0x40   : > { %v215_v17 = vadd.f32 %v214_v9, %v211_v12  ;;  %v225_v18 = vmul.f32 %v224_v15, %v223_v11  ;;  %v227_v19 = vstv %s396_s16  ;;  %s761_s26 = sld [smem:[#allocation2 + $0xb]]  ;;  %s275_s16 = scalar_lea.sflag [#allocation4], %s739_s27 }
  0x41   : > { %v228_v22 = vmul.f32 %v227_v19, %v226_v14  ;;  %v231_v23 = vstv %s397_s19  ;;  %s764_s29 = sld [smem:[#allocation2 + $0xc]]  ;;  %s524_s19 = scalar_lea.vmem %s290_s7, 64 }
  0x42   : > { %v219_v25 = vadd.f32 %v218_v13, %v215_v17  ;;  %v232_v26 = vmul.f32 %v231_v23, %v230_v16  ;;  %v235_v27 = vstv %s398_s18  ;;  %s404_s3 = sld [smem:[#allocation2 + $0xd]]  ;;  %p525_p1 = scmp.ne.s32.totalorder %s290_s7, %s524_s19 }
  0x43   : > { %v229_v29 = vadd.f32 %v228_v22, %v225_v18  ;;  %v236_v30 = vmul.f32 %v235_v27, %v234_v20  ;;  %v241_v31 = vstv %s399_s24  ;;  %s405_s17 = sld [smem:[#allocation2 + $0xe]]  ;;  %s612_s18 = smov [#allocation7]  }
  0x44   : > { %v221_v33 = vadd.f32 %v220_v21, %v219_v25  ;;  %v242_v34 = vmul.f32 %v241_v31, %v240_v24  ;;  %v244_v35 = vstv %s400_s25  ;;  %s406_s21 = sld [smem:[#allocation2 + $0xf]]  ;;  %p526_p6 = pnand %p525_p1, %p837_p4 }
  0x45   : > { %v233_v37 = vadd.f32 %v232_v26, %v229_v29  ;;  %v245_v38 = vmul.f32 %v244_v35, %v243_v28  ;;  %v248_v39 = vstv %s758_s23  ;;  %s528_s24 = sshll.u32 %s612_s18, 4  ;;  %s529_s24 = int_to_ptr.vmem [resolvable:$false] %s528_s24 }
  0x46   : > { %222 = vst [vmem:[%s773_s6] sm:$0x1] %v221_v33  ;;  %v249_v41 = vmul.f32 %v248_v39, %v247_v32  ;;  %v252_v42 = vstv %s761_s26  ;;  %p527_p8 = pneg %p526_p6  ;;  %s530_s12 = scalar_lea.vmem %s529_s24, 128 }
  0x47   : > { %v237_v44 = vadd.f32 %v236_v30, %v233_v37  ;;  %v246_v45 = vadd.f32 %v245_v38, %v242_v34  ;;  %v253_v46 = vmul.f32 %v252_v42, %v251_v36  ;;  %v258_v47 = vstv %s764_s29  ;;  %p531_p9 = scmp.lt.s32.totalorder %s290_s7, %s529_s24  ;;  %p532_p3 = scmp.lt.s32.totalorder %s530_s12, %s524_s19 }
  0x48   : > { %v259_v49 = vmul.f32 %v258_v47, %v257_v40  ;;  %v261_v50 = vstv %s404_s3 }
  0x49   : > { %v238_v52 = vadd.f32 %v237_v44, %v220_v21  ;;  %v250_v53 = vadd.f32 %v249_v41, %v246_v45  ;;  %v262_v54 = vmul.f32 %v261_v50, %v260_v43  ;;  %v265_v55 = vstv %s405_s17  ;;  %p533_p5 = por %p532_p3, %p531_p9 }
  0x4a   : > { %v266_v56 = vmul.f32 %v265_v55, %v264_v48  ;;  %v269_v57 = vstv %s406_s21 }
  0x4b   : > { %239 = vst [vmem:[%s773_s6 + $0x1] sm:$0x1] %v238_v52  ;;  %v254_v58 = vadd.f32 %v253_v46, %v250_v53  ;;  %v263_v59 = vadd.f32 %v262_v54, %v259_v49  ;;  %v270_v60 = vmul.f32 %v269_v57, %v268_v51  ;;  %p534_p7 = pnand %p533_p5, %p527_p8 }
  0x4d   : > { %v255_v61 = vadd.f32 %v254_v58, %v220_v21  ;;  %v267_v62 = vadd.f32 %v266_v56, %v263_v59 }
  0x4f   : > { %256 = vst [vmem:[%s773_s6 + $0x2] sm:$0x1] %v255_v61  ;;  %v271_v63 = vadd.f32 %v270_v60, %v267_v62 }
  0x51   : > { %v272_v0 = vadd.f32 %v271_v63, %v220_v21 }
  0x53   : > { %273 = vst [vmem:[%s773_s6 + $0x3] sm:$0x1] %v272_v0 }
  0x54   : > { %537 = shalt.err (!%p534_p7)
}
  0x55   : > { %s538_s25 = scalar_lea.hbm %s287_s15, 64  ;;  %s542_s26 = scalar_lea.hbm %s827_s2, 128 }
  0x56   : > { %p539_p2 = scmp.ne.s32.totalorder %s287_s15, %s538_s25  ;;  %p543_p13 = scmp.lt.s32.totalorder %s287_s15, %s827_s2 }
  0x57   : > { %p544_p0 = scmp.lt.s32.totalorder %s542_s26, %s538_s25 }
  0x58   : > { %p540_p11 = pnand %p539_p2, %p837_p4 }
  0x59   : > { %p545_p10 = por %p544_p0, %p543_p13 }
  0x5a   : > { %p541_p12 = pneg %p540_p11 }
  0x5c   : > { %p546_p1 = pnand %p545_p10, %p541_p12 }
  0x5e   : > { %549 = shalt.err (!%p546_p1)
}
  0x5f   : > { %418 = dma.vmem_to_hbm [thread:$0]  (%p837_p4), %s290_s7, 64, %s287_s15, %s275_s16  }
  0x60 PF: > { %s301_s17 = sand.u32 1, %s588_s9   ;;  %p838_p6 = scmp.ne.s32.totalorder %s832_s20, 0 }
  0x61   : > { %p839_p8 = scmp.ge.s32.totalorder %s608_s14, 2  ;;  %s302_s21 = scalar_lea.sflag [#allocation4], %s301_s17 }
  0x63   : > { %p429_p9 = pnand %p839_p8, %p838_p6 }
  0x65   : > { %p430_p3 = pneg %p429_p9 }
  0x67   : > { %583 = dma.done.wait (%p430_p3), %s302_s21, 64  }
  0x68   : > { %585 = vsyncadd (%p430_p3), %s302_s21, 4294967232  ;;  %s19_s14 = sadd.s32 1, %s608_s14   ;;  %s840_s9 = smov %s592_s10 }
  0x69   : > { %p16_p5 = scmp.ge.s32.totalorder %s19_s14, 4   ;;  %s841_s10 = smov %s596_s11 }
  0x6a   : > { %s842_s11 = smov %s716_s4  ;;  %s843_s12 = smov %s604_s13 }
  0x6b   : > { %s844_s13 = smov %s846_s22  ;;  %18 = sbr.rel (!%p16_p5) target bundleno = 7 (0x7), region = 78 }
  0x70   :  { %307 = vsyncpa [#allocation3], 1 }
  0x71   :  { %309 = vsyncpa [#allocation3 + $0x1], 1 }
  0x72   :  { %310 = vsyncpa [#allocation4], 1 }
  0x73   :  { %312 = vsyncpa [#allocation4 + $0x1], 1 }
  0x74   :  { %313 = vsyncpa [#allocation5], 1 }
  0x75   :  { %315 = vsyncpa [#allocation5 + $0x1], 1 }

</bundles_post_ra>
